<compile_context>
chip_gen: v6e
topology: v6e:2x2x1
jax: 0.10.0
libtpu: 0.0.40
codegen_flags: <defaults>
</compile_context>

<pallas_src>
import jax
import jax.numpy as jnp
from jax.experimental import pallas as pl
from jax.experimental.pallas import tpu as pltpu


def attention_kernel(x_ref, w1t_ref, b1_ref, w2_ref, b2_ref, ctx_ref, attn_ref):
    # x_ref:    (BB, T, D)  BB batch elements per grid step
    # w1t_ref:  (D, D)      attn_1.weight transposed (in, out)
    # b1_ref:   (1, D)
    # w2_ref:   (1, D)      attn_2.weight as a row (VPU projection, no MXU column matmul)
    # b2_ref:   (1, 1)
    # ctx_ref:  (BB, T, D)
    # attn_ref: (BB, T, S)  S = T rounded up to a multiple of 128 (lane-dense store)
    BB, T, D = x_ref.shape
    S = attn_ref.shape[-1]

    x = x_ref[...]                                              # (BB, T, D)

    # --- hidden: tanh(x @ W1^T + b1) as one (BB*T, D) x (D, D) MXU matmul ---
    h = jnp.tanh(
        jnp.dot(x.reshape(BB * T, D), w1t_ref[...],
                preferred_element_type=jnp.float32)
        + b1_ref[...]
    )                                                           # (BB*T, D)

    # --- scores on the VPU: s[b, t] = sum_d h[b, t, d] * w2[d] + b2 ---
    # Result is already lane-major (BB, T); no transpose needed.
    scores = jnp.sum(h.reshape(BB, T, D) * w2_ref[...], axis=-1) + b2_ref[...]

    # --- causal prefix softmax: row t normalizes over keys 0..t (per-row max) ---
    row = jax.lax.broadcasted_iota(jnp.int32, (BB, T, T), 1)
    col = jax.lax.broadcasted_iota(jnp.int32, (BB, T, T), 2)
    mask = col <= row
    neg_big = jnp.float32(-1e30)
    logits = jnp.where(mask, scores[:, None, :], neg_big)
    m = jnp.max(logits, axis=-1, keepdims=True)
    e = jnp.where(mask, jnp.exp(logits - m), 0.0)
    denom = jnp.sum(e, axis=-1, keepdims=True)
    p = e * pl.reciprocal(denom, approx=True)                   # EUP vrcp (free slot)

    # --- context vectors: ctx[b] = p[b] @ x[b] (batched MXU matmul) ---
    ctx = jnp.einsum("bts,bsd->btd", p, x, preferred_element_type=jnp.float32)
    ctx_ref[...] = ctx.astype(ctx_ref.dtype)

    # --- attention matrix, zero-padded to a lane-dense width S ---
    if S > T:
        p = jnp.concatenate(
            [p, jnp.zeros((BB, T, S - T), dtype=p.dtype)], axis=-1)
    attn_ref[...] = p.astype(attn_ref.dtype)


def attention_forward(x, w1, b1, w2, b2, *, block_b=None):
    """x: (B, T, D); w1: (D, D); b1: (D,); w2: (1, D); b2: (1,).

    Returns:
      context_vectors: (B, T, D)
      attention:       (B, T, T) -- row t holds the softmax weights over steps
                       0..t (zero-padded beyond t); torch returned these as a
                       python list of variable-length numpy arrays.
    """
    B, T, D = x.shape

    if block_b is None:
        # Fill the MXU M dimension (target >= 256 rows = BB*T per grid step) and
        # amortize the ~0.35us/step pipeline overhead; clip to a divisor of B.
        block_b = min(B, max(1, -(-256 // T)))
        while B % block_b != 0:
            block_b -= 1
    assert B % block_b == 0

    S = ((T + 127) // 128) * 128       # lane-dense attention output width

    w1t = jnp.transpose(w1)            # (D, D)  (in, out)
    w2r = w2.reshape(1, D)             # row vector for the VPU projection
    b1r = b1.reshape(1, D)
    b2r = b2.reshape(1, 1)

    ctx, attn_pad = pl.pallas_call(
        attention_kernel,
        out_shape=(
            jax.ShapeDtypeStruct((B, T, D), x.dtype),
            jax.ShapeDtypeStruct((B, T, S), jnp.float32),
        ),
        grid_spec=pltpu.PrefetchScalarGridSpec(
            num_scalar_prefetch=0,
            grid=(B // block_b,),
            in_specs=[
                pl.BlockSpec((block_b, T, D), lambda b: (b, 0, 0)),
                pl.BlockSpec((D, D), lambda b: (0, 0)),
                pl.BlockSpec((1, D), lambda b: (0, 0)),
                pl.BlockSpec((1, D), lambda b: (0, 0)),
                pl.BlockSpec((1, 1), lambda b: (0, 0)),
            ],
            out_specs=[
                pl.BlockSpec((block_b, T, D), lambda b: (b, 0, 0)),
                pl.BlockSpec((block_b, T, S), lambda b: (b, 0, 0)),
            ],
        ),
        compiler_params=pltpu.CompilerParams(
            dimension_semantics=("parallel",),
            # Above the default scoped limits (v5e 16 MiB, v6e/v7x 32 MiB) so the
            # large batch block fits double-buffered; below v7x's 64 MiB physical.
            vmem_limit_bytes=48 * 1024 * 1024,
        ),
    )(x, w1t, b1r, w2r, b2r)

    # TODO(synk): for very long sequences (T >= ~2k) the (BB, T, S) f32 attention
    # block needs query-dimension tiling to fit v7x's 64 MiB VMEM; at the shapes
    # used here a single tile per batch block is optimal.
    return ctx, attn_pad[:, :, :T]


def _reference(x, w1, b1, w2, b2):
    # Pure-JAX transcription of the PyTorch forward for verification.
    s = jnp.tanh(x @ w1.T + b1) @ w2.T + b2          # (B, T, 1)
    B, T, _ = x.shape
    contexts, attn_rows = [], []
    for t in range(T):
        w = jax.nn.softmax(s[:, : t + 1, :], axis=1)             # (B, t+1, 1)
        contexts.append(jnp.sum(w * x[:, : t + 1, :], axis=1))   # (B, D)
        attn_rows.append(jnp.pad(w[:, :, 0], ((0, 0), (0, T - t - 1))))
    return jnp.stack(contexts, axis=1), jnp.stack(attn_rows, axis=1)


if __name__ == "__main__":
    B, T, D = 2, 8, 32  # feature_dim = 32

    key = jax.random.PRNGKey(0)
    kx, kw1, kw2 = jax.random.split(key, 3)

    x = jax.random.normal(kx, (B, T, D), dtype=jnp.float32)

    # Deterministic parameter init mirroring the module's __init__:
    # xavier_normal_ weights, zero biases.
    w1 = jax.random.normal(kw1, (D, D), dtype=jnp.float32) * jnp.sqrt(2.0 / (D + D))
    b1 = jnp.zeros((D,), dtype=jnp.float32)
    w2 = jax.random.normal(kw2, (1, D), dtype=jnp.float32) * jnp.sqrt(2.0 / (D + 1))
    b2 = jnp.zeros((1,), dtype=jnp.float32)

    ctx, attn = attention_forward(x, w1, b1, w2, b2)
    jax.block_until_ready((ctx, attn))

    ref_ctx, ref_attn = _reference(x, w1, b1, w2, b2)
    assert ctx.shape == (B, T, D)
    assert attn.shape == (B, T, T)
    # Approximate (EUP) reciprocal in the softmax => slightly looser tolerance.
    assert jnp.allclose(ctx, ref_ctx, atol=5e-3, rtol=5e-3), "context mismatch vs reference"
    assert jnp.allclose(attn, ref_attn, atol=5e-3, rtol=5e-3), "attention mismatch vs reference"

    # TODO(synk): the torch module returns the attention weights as a python list
    # of variable-length numpy arrays (host-side .cpu().numpy()); here they are a
    # single zero-padded (B, T, T) device array.

    print("KERNEL_OK")
</pallas_src>

<mosaic_0001>
module attributes {stable_mosaic.version = 11 : i64} {
  func.func @attention_kernel(%arg0: i32, %arg1: memref<2x8x32xf32, #tpu.memory_space<vmem>>, %arg2: memref<32x32xf32, #tpu.memory_space<vmem>>, %arg3: memref<1x32xf32, #tpu.memory_space<vmem>>, %arg4: memref<1x32xf32, #tpu.memory_space<vmem>>, %arg5: memref<1x1xf32, #tpu.memory_space<vmem>>, %arg6: memref<2x8x32xf32, #tpu.memory_space<vmem>>, %arg7: memref<2x8x128xf32, #tpu.memory_space<vmem>>) attributes {dimension_semantics = [#tpu.dimension_semantics<parallel>], iteration_bounds = array<i64: 1>, scalar_prefetch = 0 : i64, scratch_operands = 0 : i64, tpu.core_type = #tpu.core_type<tc>, window_params = [{transform_indices = @transform_0, window_bounds = array<i64: 2, 8, 32>}, {pipeline_mode = #tpu.pipeline_mode<synchronous>, transform_indices = @transform_1, window_bounds = array<i64: 32, 32>}, {pipeline_mode = #tpu.pipeline_mode<synchronous>, transform_indices = @transform_2, window_bounds = array<i64: 1, 32>}, {pipeline_mode = #tpu.pipeline_mode<synchronous>, transform_indices = @transform_3, window_bounds = array<i64: 1, 32>}, {pipeline_mode = #tpu.pipeline_mode<synchronous>, transform_indices = @transform_4, window_bounds = array<i64: 1, 1>}, {transform_indices = @transform_5, window_bounds = array<i64: 2, 8, 32>}, {transform_indices = @transform_6, window_bounds = array<i64: 2, 8, 128>}]} {
    %c0 = arith.constant 0 : index
    %c0_0 = arith.constant 0 : index
    %c0_1 = arith.constant 0 : index
    %0 = vector.load %arg1[%c0, %c0_0, %c0_1] : memref<2x8x32xf32, #tpu.memory_space<vmem>>, vector<2x8x32xf32>
    %1 = vector.shape_cast %0 : vector<2x8x32xf32> to vector<16x32xf32>
    %c0_2 = arith.constant 0 : index
    %c0_3 = arith.constant 0 : index
    %2 = vector.load %arg2[%c0_2, %c0_3] : memref<32x32xf32, #tpu.memory_space<vmem>>, vector<32x32xf32>
    %cst = arith.constant dense<0.000000e+00> : vector<16x32xf32>
    %3 = tpu.matmul %1, %2, %cst {dimension_numbers = #tpu.dot_dimension_numbers<[1], [0], [0], [1], [0, 0, 1, 1], [], []>} : vector<16x32xf32>, vector<32x32xf32>, vector<16x32xf32> -> vector<16x32xf32>
    %c0_4 = arith.constant 0 : index
    %c0_5 = arith.constant 0 : index
    %4 = vector.load %arg3[%c0_4, %c0_5] : memref<1x32xf32, #tpu.memory_space<vmem>>, vector<1x32xf32>
    %5 = vector.broadcast %4 : vector<1x32xf32> to vector<16x32xf32>
    %6 = arith.addf %3, %5 : vector<16x32xf32>
    %7 = math.tanh %6 : vector<16x32xf32>
    %8 = vector.shape_cast %7 : vector<16x32xf32> to vector<2x8x32xf32>
    %c0_6 = arith.constant 0 : index
    %c0_7 = arith.constant 0 : index
    %9 = vector.load %arg4[%c0_6, %c0_7] : memref<1x32xf32, #tpu.memory_space<vmem>>, vector<1x32xf32>
    %10 = vector.shape_cast %9 : vector<1x32xf32> to vector<1x1x32xf32>
    %11 = vector.broadcast %10 : vector<1x1x32xf32> to vector<2x8x32xf32>
    %12 = arith.mulf %8, %11 : vector<2x8x32xf32>
    %cst_8 = arith.constant dense<0.000000e+00> : vector<2x8xf32>
    %13 = vector.multi_reduction <add>, %12, %cst_8 [2] : vector<2x8x32xf32> to vector<2x8xf32>
    %c0_9 = arith.constant 0 : index
    %c0_10 = arith.constant 0 : index
    %14 = vector.load %arg5[%c0_9, %c0_10] : memref<1x1xf32, #tpu.memory_space<vmem>>, vector<1x1xf32>
    %15 = vector.broadcast %14 : vector<1x1xf32> to vector<2x8xf32>
    %16 = arith.addf %13, %15 : vector<2x8xf32>
    %17 = tpu.iota {dimensions = array<i32: 1>} : vector<2x8x8xi32>
    %18 = tpu.iota {dimensions = array<i32: 2>} : vector<2x8x8xi32>
    %19 = arith.cmpi sle, %18, %17 : vector<2x8x8xi32>
    %20 = vector.shape_cast %16 : vector<2x8xf32> to vector<2x1x8xf32>
    %cst_11 = arith.constant -1.000000e+30 : f32
    %21 = vector.shape_cast %20 : vector<2x1x8xf32> to vector<2x1x8xf32>
    %22 = vector.broadcast %21 : vector<2x1x8xf32> to vector<2x8x8xf32>
    %23 = vector.broadcast %cst_11 : f32 to vector<2x8x8xf32>
    %24 = arith.select %19, %22, %23 : vector<2x8x8xi1>, vector<2x8x8xf32>
    %cst_12 = arith.constant dense<0xFF800000> : vector<2x8xf32>
    %25 = vector.multi_reduction <maximumf>, %24, %cst_12 [2] : vector<2x8x8xf32> to vector<2x8xf32>
    %26 = vector.shape_cast %25 : vector<2x8xf32> to vector<2x8x1xf32>
    %27 = vector.broadcast %26 : vector<2x8x1xf32> to vector<2x8x8xf32>
    %28 = arith.subf %24, %27 : vector<2x8x8xf32>
    %29 = math.exp %28 : vector<2x8x8xf32>
    %cst_13 = arith.constant 0.000000e+00 : f32
    %30 = vector.broadcast %cst_13 : f32 to vector<2x8x8xf32>
    %31 = arith.select %19, %29, %30 : vector<2x8x8xi1>, vector<2x8x8xf32>
    %cst_14 = arith.constant dense<0.000000e+00> : vector<2x8xf32>
    %32 = vector.multi_reduction <add>, %31, %cst_14 [2] : vector<2x8x8xf32> to vector<2x8xf32>
    %33 = vector.shape_cast %32 : vector<2x8xf32> to vector<2x8x1xf32>
    %34 = tpu.reciprocal %33 {approx = true} : vector<2x8x1xf32> -> vector<2x8x1xf32>
    %35 = vector.broadcast %34 : vector<2x8x1xf32> to vector<2x8x8xf32>
    %36 = arith.mulf %31, %35 : vector<2x8x8xf32>
    "tpu.trace_start"() <{level = 10 : i32, message = "bts,bsd->btd"}> : () -> ()
    %cst_15 = arith.constant dense<0.000000e+00> : vector<2x8x32xf32>
    %37 = tpu.matmul %36, %0, %cst_15 {dimension_numbers = #tpu.dot_dimension_numbers<[2], [1], [1], [2], [0, 0, 0, 1, 1, 2], [0], [0]>} : vector<2x8x8xf32>, vector<2x8x32xf32>, vector<2x8x32xf32> -> vector<2x8x32xf32>
    "tpu.trace_stop"() : () -> ()
    %c0_16 = arith.constant 0 : index
    %c0_17 = arith.constant 0 : index
    %c0_18 = arith.constant 0 : index
    %38 = vector.load %arg6[%c0_16, %c0_17, %c0_18] : memref<2x8x32xf32, #tpu.memory_space<vmem>>, vector<2x8x32xf32>
    tpu.vector_store %arg6[%c0_16, %c0_17, %c0_18], %37 {strides = array<i32>} : memref<2x8x32xf32, #tpu.memory_space<vmem>>, vector<2x8x32xf32>,
    %cst_19 = arith.constant 0.000000e+00 : f32
    %39 = vector.broadcast %cst_19 : f32 to vector<2x8x120xf32>
    %40 = tpu.concatenate %36, %39 in 2 : vector<2x8x8xf32>, vector<2x8x120xf32> -> vector<2x8x128xf32>
    %c0_20 = arith.constant 0 : index
    %c0_21 = arith.constant 0 : index
    %c0_22 = arith.constant 0 : index
    %41 = vector.load %arg7[%c0_20, %c0_21, %c0_22] : memref<2x8x128xf32, #tpu.memory_space<vmem>>, vector<2x8x128xf32>
    tpu.vector_store %arg7[%c0_20, %c0_21, %c0_22], %40 {strides = array<i32>} : memref<2x8x128xf32, #tpu.memory_space<vmem>>, vector<2x8x128xf32>,
    return
  }
  func.func @transform_0(%arg0: i32) -> (i32, i32, i32) {
    %c0_i32 = arith.constant 0 : i32
    %c0_i32_0 = arith.constant 0 : i32
    %c0_i32_1 = arith.constant 0 : i32
    return %arg0, %c0_i32, %c0_i32_0 : i32, i32, i32
  }
  func.func @transform_1(%arg0: i32) -> (i32, i32) {
    %c0_i32 = arith.constant 0 : i32
    %c0_i32_0 = arith.constant 0 : i32
    %c0_i32_1 = arith.constant 0 : i32
    return %c0_i32, %c0_i32_0 : i32, i32
  }
  func.func @transform_2(%arg0: i32) -> (i32, i32) {
    %c0_i32 = arith.constant 0 : i32
    %c0_i32_0 = arith.constant 0 : i32
    %c0_i32_1 = arith.constant 0 : i32
    return %c0_i32, %c0_i32_0 : i32, i32
  }
  func.func @transform_3(%arg0: i32) -> (i32, i32) {
    %c0_i32 = arith.constant 0 : i32
    %c0_i32_0 = arith.constant 0 : i32
    %c0_i32_1 = arith.constant 0 : i32
    return %c0_i32, %c0_i32_0 : i32, i32
  }
  func.func @transform_4(%arg0: i32) -> (i32, i32) {
    %c0_i32 = arith.constant 0 : i32
    %c0_i32_0 = arith.constant 0 : i32
    %c0_i32_1 = arith.constant 0 : i32
    return %c0_i32, %c0_i32_0 : i32, i32
  }
  func.func @transform_5(%arg0: i32) -> (i32, i32, i32) {
    %c0_i32 = arith.constant 0 : i32
    %c0_i32_0 = arith.constant 0 : i32
    %c0_i32_1 = arith.constant 0 : i32
    return %arg0, %c0_i32, %c0_i32_0 : i32, i32, i32
  }
  func.func @transform_6(%arg0: i32) -> (i32, i32, i32) {
    %c0_i32 = arith.constant 0 : i32
    %c0_i32_0 = arith.constant 0 : i32
    %c0_i32_1 = arith.constant 0 : i32
    return %arg0, %c0_i32, %c0_i32_0 : i32, i32, i32
  }
}

</mosaic_0001>

<bundles_post_ra>
// kernel: tpu_custom_call.1
= control target key start
LH: loop header
LB: loop body
LE: loop exit
PB: predicated region body
PF: predicated region fallthrough
CT: control target
= control target key end

     0   :  { %s678_s0 = inlined_call_operand.hbm [shape: f32[2,8,32], index: 0, kind: input, shape index: {}]   ;;  %s679_s1 = inlined_call_operand.hbm [shape: f32[32,32], index: 1, kind: input, shape index: {}]   ;;  %s680_s2 = inlined_call_operand.vmem [shape: f32[1,32], index: 2, kind: input, shape index: {}]   ;;  %s681_s3 = inlined_call_operand.vmem [shape: f32[1,32], index: 3, kind: input, shape index: {}]   ;;  %s682_s4 = inlined_call_operand.<no memory space> [shape: f32[1,1], index: 4, kind: input, shape index: {}]   ;;  %s683_s5 = inlined_call_operand.hbm [shape: f32[2,8,32], index: 5, kind: output, shape index: {0}]   ;;  %s684_s6 = inlined_call_operand.hbm [shape: f32[2,8,128], index: 6, kind: output, shape index: {1}]  }
   0x1   :  { %v12_v0 = vstv %s682_s4 }
   0x2   :  { %13 = vst [vmem:[#allocation2] sm:$0x1] %v12_v0 }
   0x3   :  { %14 = vsyncpa [#allocation4], 0 }
   0x4   :  { %15 = vsyncpa [#allocation7], 0 }
   0x5   :  { %16 = vsyncpa [#allocation5], 0 }
   0x6   :  { %17 = vsyncpa [#allocation10], 0  ;;  %s575_s23 = smov [#allocation3]  }
   0x7   :  { %s23_s24 = sshll.u32 %s575_s23, 4  ;;  %s24_s24 = int_to_ptr.vmem [resolvable:$true] %s23_s24 }
   0x8   :  { %s495_s25 = scalar_lea.vmem %s24_s24, 256  ;;  %p500_p1 = scmp.lt.s32.totalorder %s24_s24, %s24_s24 }
   0x9   :  { %p496_p0 = scmp.ne.s32.totalorder %s24_s24, %s495_s25  ;;  %p501_p2 = scmp.lt.s32.totalorder %s495_s25, %s495_s25 }
   0xb   :  { %p502_p3 = por %p501_p2, %p500_p1 }
   0xd   :  { %p503_p4 = pnand %p502_p3, %p496_p0 }
   0xf   :  { %506 = shalt.err (!%p503_p4)
}
  0x10   :  { %s576_s26 = smov 128   ;;  %s577_s27 = smov 8  }
  0x11   :  { %29 = dma.hbm_to_vmem [thread:$0]  %s678_s0, 256, %s24_s24, [#allocation4], %s576_s26, %s576_s26, %s577_s27  }
  0x12   :  { %s578_s29 = smov [#allocation6]  }
  0x13   :  { %s35_s30 = sshll.u32 %s578_s29, 4  ;;  %s36_s30 = int_to_ptr.vmem [resolvable:$true] %s35_s30 }
  0x14   :  { %s515_s7 = scalar_lea.vmem %s36_s30, 512  ;;  %p520_p6 = scmp.lt.s32.totalorder %s36_s30, %s36_s30 }
  0x15   :  { %p516_p5 = scmp.ne.s32.totalorder %s36_s30, %s515_s7  ;;  %p521_p7 = scmp.lt.s32.totalorder %s515_s7, %s515_s7 }
  0x17   :  { %p522_p8 = por %p521_p7, %p520_p6 }
  0x19   :  { %p523_p9 = pnand %p522_p8, %p516_p5 }
  0x1b   :  { %526 = shalt.err (!%p523_p9)
}
  0x1c   :  { %41 = dma.hbm_to_vmem [thread:$0]  %s679_s1, 512, %s36_s30, [#allocation7], %s576_s26, %s576_s26, %s577_s27  }
  0x1d   :  { %567 = dma.done.wait [#allocation4], 256  }
  0x1e   :  { %568 = vsyncadd [#allocation4], 4294967040 }
  0x1f   :  { %569 = dma.done.wait [#allocation7], 512  }
  0x20   :  { %570 = vsyncadd [#allocation7], 4294966784  ;;  %vm67_vm0 = vcmask 261120   ;;  %v59_v1 = vld [vmem:[#allocation6 + $0x18] sm:$0xff]  ;;  %v58_v2 = vld [vmem:[#allocation6 + $0x10] sm:$0xff]  ;;  %v579_v8 = vmov 0   ;;  %v178_v21 = vlaneseq }
  0x21   :  { %443 = vmatprep.subr.mxu0 %v59_v1  ;;  %v634_v3 = vld [vmem:[#allocation3] sm:$0xff]  ;;  %v57_v4 = vld [vmem:[#allocation6 + $0x8] sm:$0xff]  ;;  %v56_v5 = vld [vmem:[#allocation6] sm:$0xff]  ;;  %473 = vset.pattern.permute.xlu1 %v579_v8  ;;  %vm215_vm2 = vcmask 64512   ;;  %v580_v48 = vmov 0.0   ;;  %vm581_vm3 = vmmov 0  }
  0x22   :  { %444 = vmatpush3.msra.mxu0 %v59_v1  ;;  %451 = vmatprep.mubr.msk.f32.mxu0 %vm67_vm0, %v634_v3  ;;  %v638_v6 = vld [vmem:[#allocation3 + $0x8] sm:$0xff]  ;;  %v430_v7 = vld [vmem:[#allocation2] ss:$0 sm:$0xff]  ;;  %v179_v22 = vshrl.u32 %v178_v21, 7  ;;  %v181_v23 = vand.u32 127, %v178_v21 }
  0x23   :  { %445 = vmatprep.subr.mxu0 %v58_v2  ;;  %474 = vset.pattern.permute.xlu0 %v579_v8  ;;  %v426_v9 = vld [vmem:[%s680_s2] ss:$0 sm:$0xff]  ;;  %s582_s2 = smov [#allocation9]  }
  0x24   :  { %446 = vmatpush3.msra.mxu0 %v58_v2  ;;  %173 = vperm.xlu1 %473, %v430_v7   ;;  %v429_v16 = vld [vmem:[%s681_s3] ss:$0 sm:$0xff]  ;;  %v187_v25 = vsub.s32 %v181_v23, %v179_v22  ;;  %vm182_vm1 = vcmp.le.s32.totalorder %v181_v23, %v179_v22  ;;  %s409_s3 = sshll.u32 %s582_s2, 4  ;;  %s410_s3 = int_to_ptr.vmem [resolvable:$true] %s409_s3 }
  0x25   :  { %447 = vmatprep.subr.mxu0 %v57_v4  ;;  %454 = vmatprep.subr.mxu1 %v580_v48  ;;  %s527_s12 = scalar_lea.vmem %s410_s3, 256  ;;  %p532_p11 = scmp.lt.s32.totalorder %s410_s3, %s410_s3 }
  0x26   :  { %448 = vmatpush3.msra.mxu0 %v57_v4  ;;  %456 = vmatprep.mubr.msk.f32.mxu1 %vm581_vm3, %v580_v48  ;;  %p528_p10 = scmp.ne.s32.totalorder %s410_s3, %s527_s12  ;;  %p533_p12 = scmp.lt.s32.totalorder %s527_s12, %s527_s12 }
  0x27   :  { %449 = vmatprep.subr.mxu0 %v56_v5  ;;  %455 = vmatpush3.msra.mxu1 %v634_v3 }
  0x28   :  { %450 = vmatpush3.msra.mxu0 %v56_v5  ;;  %459 = vmatprep.subr.mxu1 %v580_v48  ;;  %p534_p13 = por %p533_p12, %p532_p11 }
  0x29   :  { %452 = vmatmul.mubr.msk.f32.vlgmr.msra.gmra.mxu0 %vm67_vm0, %v638_v6 }
  0x2a   :  { %p535_p0 = pnand %p534_p13, %p528_p10 }
  0x9f   :  { %v174_v24 = vpop.permute.xlu1 %173 }
  0xe9   :  { %v453_v10 = vpop.f32.mrf.mxu0 }
  0xea   :  { %v146_v11 = vadd.f32 %v453_v10, %v426_v9 }
  0xeb   :  { %v140_v12 = vpop.f32.mrf.mxu0 }
  0xec   :  { %v141_v13 = vadd.f32 %v426_v9, %v140_v12  ;;  %475 = vtanh.f32 %v146_v11 }
  0xee   :  { %477 = vtanh.f32 %v141_v13 }
  0xf9   :  { %v476_v14 = vpop.eup %475 }
  0xfa   :  { %v159_v19 = vmul.f32 %v476_v14, %v429_v16 }
  0xfb   :  { %v478_v15 = vpop.eup %477 }
  0xfc   :  { %v158_v17 = vmul.f32 %v478_v15, %v429_v16  ;;  %v163_v20 = vsel %vm67_vm0, %v159_v19, 0.0 }
  0xfe   :  { %v160_v18 = vsel %vm67_vm0, %v158_v17, 0.0 }
  0xff   :  { %161 = vadd.xlane.f32.xlu0 %v160_v18 }
 0x103   :  { %164 = vadd.xlane.f32.xlu0 %v163_v20 }
 0x188   :  { %v162_v26 = vpop.xlane.xlu0 %161 }
 0x189   :  { %v176_v27 = vadd.f32 %v174_v24, %v162_v26 }
 0x18b   :  { %v188_v28 = vrot.slane %v176_v27, %v187_v25 }
 0x18c   :  { %v165_v29 = vpop.xlane.xlu0 %164 }
 0x18d   :  { %v177_v30 = vadd.f32 %v174_v24, %v165_v29  ;;  %v213_v31 = vsel %vm182_vm1, %v188_v28, -1e+30 }
 0x18e   :  { %v216_v32 = vsel %vm215_vm2, %v213_v31, -inf }
 0x18f   :  { %v192_v33 = vrot.slane %v177_v30, %v187_v25  ;;  %217 = vmax.xlane.f32.xlu1 %v216_v32 }
 0x191   :  { %v214_v34 = vsel %vm182_vm1, %v192_v33, -1e+30 }
 0x192   :  { %v219_v35 = vsel %vm215_vm2, %v214_v34, -inf }
 0x193   :  { %220 = vmax.xlane.f32.xlu0 %v219_v35 }
 0x218   :  { %v218_v36 = vpop.xlane.xlu1 %217 }
 0x219   :  { %v222_v37 = vsub.f32 %v213_v31, %v218_v36 }
 0x21b   :  { %v224_v38 = vmul.f32 1.442695, %v222_v37 }
 0x21c   :  { %v221_v39 = vpop.xlane.xlu0 %220 }
 0x21d   :  { %479 = vpow2.f32 %v224_v38  ;;  %v223_v40 = vsub.f32 %v214_v34, %v221_v39 }
 0x21f   :  { %v226_v41 = vmul.f32 1.442695, %v223_v40 }
 0x221   :  { %481 = vpow2.f32 %v226_v41 }
 0x22a   :  { %v480_v42 = vpop.eup %479 }
 0x22b   :  { %v228_v43 = vsel %vm182_vm1, %v480_v42, 0.0 }
 0x22c   :  { %v230_v44 = vsel %vm215_vm2, %v228_v43, 0.0 }
 0x22d   :  { %231 = vadd.xlane.f32.xlu0 %v230_v44 }
 0x22e   :  { %v482_v45 = vpop.eup %481 }
 0x22f   :  { %v229_v46 = vsel %vm182_vm1, %v482_v45, 0.0 }
 0x230   :  { %v233_v47 = vsel %vm215_vm2, %v229_v46, 0.0 }
 0x231   :  { %234 = vadd.xlane.f32.xlu0 %v233_v47 }
 0x2b6   :  { %v232_v49 = vpop.xlane.xlu0 %231 }
 0x2b7   :  { %483 = vrcp.f32 %v232_v49 }
 0x2ba   :  { %v235_v50 = vpop.xlane.xlu0 %234 }
 0x2bb   :  { %485 = vrcp.f32 %v235_v50 }
 0x2c4   :  { %v484_v51 = vpop.eup %483 }
 0x2c5   :  { %v238_v52 = vmul.f32 %v484_v51, %v228_v43 }
 0x2c7   :  { %457 = vmatmul.mubr.msk.f32.vlgmr.msra.gmra.mxu1 %vm215_vm2, %v238_v52  ;;  %v388_v53 = vsel %vm215_vm2, %v238_v52, 0.0 }
 0x2c8   :  { %v486_v54 = vpop.eup %485  ;;  %460 = vmatpush3.msra.mxu1 %v638_v6  ;;  %461 = vmatprep.mubr.msk.f32.mxu1 %vm581_vm3, %v580_v48  ;;  %390 = vst [vmem:[#allocation9] sm:$0xff] %v388_v53 }
 0x2c9   :  { %v239_v55 = vmul.f32 %v486_v54, %v229_v46 }
 0x2cb   :  { %462 = vmatmul.mubr.msk.f32.vlgmr.msra.gmra.mxu1 %vm215_vm2, %v239_v55  ;;  %v389_v56 = vsel %vm215_vm2, %v239_v55, 0.0 }
 0x2cc   :  { %391 = vst [vmem:[#allocation9 + $0x8] sm:$0xff] %v389_v56 }
 0x2cd   :  { %538 = shalt.err (!%p535_p0)
}
 0x2ce   :  { %415 = dma.vmem_to_hbm [thread:$0]  %s410_s3, 256, %s684_s6, [#allocation10], %s576_s26, %s576_s26, %s577_s27  }
 0x2cf   :  { %s583_s15 = smov [#allocation8]  }
 0x2d0   :  { %s397_s16 = sshll.u32 %s583_s15, 4  ;;  %s398_s16 = int_to_ptr.vmem [resolvable:$true] %s397_s16 }
 0x2d1   :  { %s547_s17 = scalar_lea.vmem %s398_s16, 256  ;;  %p552_p2 = scmp.lt.s32.totalorder %s398_s16, %s398_s16 }
 0x2d2   :  { %p548_p1 = scmp.ne.s32.totalorder %s398_s16, %s547_s17  ;;  %p553_p3 = scmp.lt.s32.totalorder %s547_s17, %s547_s17 }
 0x2d4   :  { %p554_p4 = por %p553_p3, %p552_p2 }
 0x2d6   :  { %p555_p5 = pnand %p554_p4, %p548_p1 }
 0x387   :  { %v309_v57 = vpop.f32.mrf.mxu1 }
 0x388   :  { %386 = vst.msk [vmem:[#allocation8] sm:$0xff] %vm67_vm0, %v309_v57 }
 0x389   :  { %v458_v58 = vpop.f32.mrf.mxu1 }
 0x38b   :  { %v382_v59 = vpop.f32.mrf.mxu1 }
 0x38c   :  { %387 = vst.msk [vmem:[#allocation8 + $0x8] sm:$0xff] %vm67_vm0, %v382_v59 }
 0x38d   :  { %v463_v60 = vpop.f32.mrf.mxu1 }
 0x38e   :  { %558 = shalt.err (!%p555_p5)
}
 0x38f   :  { %403 = dma.vmem_to_hbm [thread:$0]  %s398_s16, 256, %s683_s5, [#allocation5], %s576_s26, %s576_s26, %s577_s27  }
 0x390   :  { %571 = dma.done.wait [#allocation5], 256  }
 0x391   :  { %572 = vsyncadd [#allocation5], 4294967040 }
 0x392   :  { %573 = dma.done.wait [#allocation10], 256  }
 0x393   :  { %574 = vsyncadd [#allocation10], 4294967040 }
 0x394   :  { %422 = vsyncpa [#allocation4], 1 }
 0x395   :  { %423 = vsyncpa [#allocation7], 1 }
 0x396   :  { %424 = vsyncpa [#allocation5], 1 }
 0x397   :  { %425 = vsyncpa [#allocation10], 1 }

</bundles_post_ra>
